<compile_context>
chip_gen: v5e
topology: v5e:2x2
jax: 0.10.0
libtpu: 0.0.40
codegen_flags: <defaults>
</compile_context>

<pallas_src>
import jax
import jax.numpy as jnp
from jax.experimental import pallas as pl
from jax.experimental.pallas import tpu as pltpu


def _round_up(x, m):
    return ((x + m - 1) // m) * m


def _chip_defaults():
    """Per-generation (vocab tile, TC split, scoped-VMEM cap) for the head."""
    try:
        kind = jax.devices()[0].device_kind.lower()
    except Exception:  # pragma: no cover - defensive
        kind = ""
    if "v7" in kind:
        # 64 MiB VMEM per TC, 2 TensorCores/chip, ~3.2 TB/s HBM.
        return 4096, 2, 48 << 20
    if "v6" in kind:
        # 128 MiB VMEM, ~1.4 TB/s HBM.
        return 4096, 1, 100 << 20
    if "v5" in kind:
        # 128 MiB physical VMEM but only a 16 MiB default scoped limit.
        return 2048, 1, 100 << 20
    return 2048, 1, 64 << 20


# ----------------------------------------------------------------------------
# Fused LM-head + RM-head Pallas kernel (last token only, tiled over V)
# ----------------------------------------------------------------------------
def _fused_lm_rm_head_kernel(h_ref, wlm_ref, wrm_ref, o_ref):
    # h_ref:   [B, H]    bf16  (last-token hidden, resident across the grid)
    # wlm_ref: [H, tn]   bf16  (LM-head weight vocab tile)
    # wrm_ref: [1, tn]   f32   (RM-head weight vocab tile)
    # o_ref:   [1, B, 1] f32   (per-split partial sum, resident across V axis)
    v = pl.program_id(1)

    @pl.when(v == 0)
    def _init():
        o_ref[...] = jnp.zeros_like(o_ref)

    # LM-head partial logits for this vocab tile (MXU, f32 accumulate),
    # rounded through bf16 to match base_model's bf16 logits output.
    logits = jnp.dot(h_ref[...], wlm_ref[...],
                     preferred_element_type=jnp.float32)            # [B, tn]
    logits = logits.astype(jnp.bfloat16).astype(jnp.float32)

    # RM-head partial: VPU multiply + lane reduction (keeps the degenerate
    # N=1 matmul off the MXU).  Accumulate into the resident output block.
    o_ref[...] += jnp.sum(logits * wrm_ref[...], axis=-1,
                          keepdims=True)[None, :, :]


def fused_rm_head_pallas(h_last, w_lm, w_rm, b_rm, *,
                         tn=None, n_split=None, vmem_cap=None):
    """sigmoid((h_last @ W_lm).bf16.f32 @ w_rm.T + b) -> [B] float32."""
    B, H = h_last.shape
    V = w_lm.shape[1]

    d_tn, d_split, d_cap = _chip_defaults()
    tn = d_tn if tn is None else tn
    n_split = d_split if n_split is None else n_split
    vmem_cap = d_cap if vmem_cap is None else vmem_cap

    # Lane-dense vocab tile; never larger than the (128-rounded) vocab.
    tn = max(128, min(_round_up(tn, 128), _round_up(V, 128)))
    chunk = tn * n_split

    # Zero-pad the vocab axis so grid = (n_split, Vp // chunk) covers it
    # exactly; padded columns contribute 0 to the reward sum.  In a real
    # deployment the padded weights would be prepared once, offline.
    Vp = _round_up(V, chunk)
    if Vp != V:
        w_lm = jnp.pad(w_lm, ((0, 0), (0, Vp - V)))
        w_rm = jnp.pad(w_rm, ((0, 0), (0, Vp - V)))
    steps_per_split = Vp // chunk

    w_rm = w_rm.astype(jnp.float32)

    # Pure HBM-stream kernel: size the scoped-VMEM limit to the double-
    # buffered tiles (+margin) so large tn never trips the 16/32 MiB
    # per-generation defaults, but stay inside v7x's 64 MiB physical VMEM.
    needed = 2 * (H * tn * 2 + tn * 4) + B * H * 2 + n_split * B * 4
    vmem_limit = int(min(vmem_cap, max(2 * needed, 32 << 20)))

    cost = pl.CostEstimate(
        flops=2 * B * H * Vp + 2 * B * Vp,
        transcendentals=0,
        bytes_accessed=H * Vp * 2 + Vp * 4 + B * H * 2 + n_split * B * 4,
    )

    partials = pl.pallas_call(
        _fused_lm_rm_head_kernel,
        out_shape=jax.ShapeDtypeStruct((n_split, B, 1), jnp.float32),
        grid_spec=pltpu.PrefetchScalarGridSpec(
            num_scalar_prefetch=0,
            grid=(n_split, steps_per_split),
            in_specs=[
                # h_last stays resident across the whole grid.
                pl.BlockSpec((B, H), lambda c, v: (0, 0)),
                # W_lm / w_rm vocab tiles: split c owns a contiguous range.
                pl.BlockSpec((H, tn),
                             lambda c, v: (0, c * steps_per_split + v)),
                pl.BlockSpec((1, tn),
                             lambda c, v: (0, c * steps_per_split + v)),
            ],
            out_specs=pl.BlockSpec((1, B, 1), lambda c, v: (c, 0, 0)),
        ),
        compiler_params=pltpu.CompilerParams(
            # c: independent (megacore-shardable on v7x); v: reduction.
            dimension_semantics=("parallel", "arbitrary"),
            vmem_limit_bytes=vmem_limit,
        ),
        cost_estimate=cost,
    )(h_last, w_lm, w_rm)

    # Combine the per-core partials, add bias, sigmoid (trivial cost).
    bias = jnp.reshape(jnp.asarray(b_rm, jnp.float32), ())   # (1,)/(1,1)/() ok
    y = jnp.sum(partials, axis=0)[:, 0] + bias                       # [B]
    return jax.nn.sigmoid(y)


# ----------------------------------------------------------------------------
# Full QwenVL_RM forward (synthetic base model + fused Pallas head)
# ----------------------------------------------------------------------------
def qwenvl_rm_forward(params, input_ids, attention_mask, pixel_values,
                      image_grid_thw):
    # Only logits[:, -1, :] is consumed downstream, so the synthetic base
    # model's hidden state is evaluated for the final position only.
    # NOTE: the PyTorch spec slices position -1 unconditionally, so the
    # attention mask is applied to that same position (not "last non-padded").
    h_last = jnp.take(params["emb"], input_ids[:, -1], axis=0)      # [B,H] bf16

    # Crude vision pathway (glue): mean-pool patches, project to H, normalize
    # by the number of image positions from image_grid_thw, broadcast-add.
    vis_feat = jnp.mean(pixel_values.astype(jnp.float32), axis=0)   # [P]
    vis_proj = vis_feat @ params["w_vis"].astype(jnp.float32)       # [H]
    n_img = jnp.maximum(jnp.sum(jnp.prod(image_grid_thw, axis=-1)), 1)
    vis_proj = vis_proj / jnp.sqrt(n_img.astype(jnp.float32))
    h_last = h_last + vis_proj.astype(jnp.bfloat16)[None, :]

    # Attention mask on the final position.
    h_last = h_last * attention_mask[:, -1].astype(jnp.bfloat16)[:, None]

    # Fused LM head + RM head (single Pallas kernel) -> [B] f32
    return fused_rm_head_pallas(h_last, params["w_lm"],
                                params["w_rm"], params["b_rm"])


# ----------------------------------------------------------------------------
# Pure-JAX reference (full [B,S,V] logits path, matching the original module)
# ----------------------------------------------------------------------------
def reference_forward(params, input_ids, attention_mask, pixel_values,
                      image_grid_thw):
    hidden = jnp.take(params["emb"], input_ids, axis=0)             # [B,S,H]
    vis_feat = jnp.mean(pixel_values.astype(jnp.float32), axis=0)
    vis_proj = vis_feat @ params["w_vis"].astype(jnp.float32)
    n_img = jnp.maximum(jnp.sum(jnp.prod(image_grid_thw, axis=-1)), 1)
    vis_proj = vis_proj / jnp.sqrt(n_img.astype(jnp.float32))
    hidden = hidden + vis_proj.astype(jnp.bfloat16)[None, None, :]
    hidden = hidden * attention_mask.astype(jnp.bfloat16)[:, :, None]
    logits = jnp.einsum("bsh,hv->bsv", hidden, params["w_lm"],
                        preferred_element_type=jnp.float32).astype(jnp.bfloat16)
    x = logits[:, -1, :].astype(jnp.float32)                        # [B, V]
    y = jnp.sum(x * params["w_rm"].astype(jnp.float32), axis=-1)
    y = y + jnp.reshape(params["b_rm"].astype(jnp.float32), ())
    return jax.nn.sigmoid(y)                                        # [B]


# ----------------------------------------------------------------------------
if __name__ == "__main__":
    # Small shapes consistent with the forward pass
    B, S, H, V = 2, 8, 32, 256          # batch, seq, hidden, vocab
    NPATCH, PDIM = 16, 64               # synthetic vision patches

    key = jax.random.PRNGKey(0)
    k_emb, k_vis, k_lm, k_rm, k_ids, k_px = jax.random.split(key, 6)

    params = {
        "emb":  (jax.random.normal(k_emb, (V, H), jnp.float32) * 0.02
                 ).astype(jnp.bfloat16),
        "w_vis": (jax.random.normal(k_vis, (PDIM, H), jnp.float32) * 0.02
                  ).astype(jnp.bfloat16),
        "w_lm": (jax.random.normal(k_lm, (H, V), jnp.float32) * 0.02
                 ).astype(jnp.bfloat16),
        # nn.Linear(vocab_size, 1): weight [1, V], bias [1] (HF-style).
        "w_rm": jax.random.normal(k_rm, (1, V), jnp.float32) * 0.05,
        "b_rm": jnp.array([0.1], jnp.float32),
    }

    input_ids = jax.random.randint(k_ids, (B, S), 0, V, dtype=jnp.int32)
    attention_mask = jnp.ones((B, S), jnp.int32)
    pixel_values = jax.random.normal(k_px, (NPATCH, PDIM), jnp.float32
                                     ).astype(jnp.bfloat16)
    image_grid_thw = jnp.array([[1, 4, 4], [1, 4, 4]], jnp.int32)

    out = qwenvl_rm_forward(params, input_ids, attention_mask,
                            pixel_values, image_grid_thw)
    out = jax.block_until_ready(out)

    ref = reference_forward(params, input_ids, attention_mask,
                            pixel_values, image_grid_thw)
    ref = jax.block_until_ready(ref)

    assert out.shape == (B,), out.shape
    assert jnp.allclose(out, ref, atol=2e-3, rtol=2e-3), (out, ref)
    print("KERNEL_OK")
</pallas_src>

<mosaic_0001>
module attributes {stable_mosaic.version = 11 : i64} {
  func.func @_fused_lm_rm_head_kernel(%arg0: i32, %arg1: i32, %arg2: memref<2x32xbf16, #tpu.memory_space<vmem>>, %arg3: memref<32x256xbf16, #tpu.memory_space<vmem>>, %arg4: memref<1x256xf32, #tpu.memory_space<vmem>>, %arg5: memref<1x2x1xf32, #tpu.memory_space<vmem>>) attributes {dimension_semantics = [#tpu.dimension_semantics<parallel>, #tpu.dimension_semantics<arbitrary>], iteration_bounds = array<i64: 1, 1>, scalar_prefetch = 0 : i64, scratch_operands = 0 : i64, tpu.core_type = #tpu.core_type<tc>, window_params = [{pipeline_mode = #tpu.pipeline_mode<synchronous>, transform_indices = @transform_0, window_bounds = array<i64: 2, 32>}, {transform_indices = @transform_1, window_bounds = array<i64: 32, 256>}, {transform_indices = @transform_2, window_bounds = array<i64: 1, 256>}, {transform_indices = @transform_3, window_bounds = array<i64: 1, 2, 1>}]} {
    %c0_i32 = arith.constant 0 : i32
    %0 = arith.cmpi eq, %arg1, %c0_i32 : i32
    %1 = arith.extui %0 : i1 to i32
    %c0_i32_0 = arith.constant 0 : i32
    %2 = arith.cmpi ne, %1, %c0_i32_0 : i32
    scf.if %2 {
      %cst_13 = arith.constant 0.000000e+00 : f32
      %17 = vector.broadcast %cst_13 : f32 to vector<1x2x1xf32>
      %c0_14 = arith.constant 0 : index
      %c0_15 = arith.constant 0 : index
      %c0_16 = arith.constant 0 : index
      %18 = vector.load %arg5[%c0_14, %c0_15, %c0_16] : memref<1x2x1xf32, #tpu.memory_space<vmem>>, vector<1x2x1xf32>
      tpu.vector_store %arg5[%c0_14, %c0_15, %c0_16], %17 {strides = array<i32>} : memref<1x2x1xf32, #tpu.memory_space<vmem>>, vector<1x2x1xf32>,
    } else {
    }
    %c0 = arith.constant 0 : index
    %c0_1 = arith.constant 0 : index
    %3 = vector.load %arg2[%c0, %c0_1] : memref<2x32xbf16, #tpu.memory_space<vmem>>, vector<2x32xbf16>
    %c0_2 = arith.constant 0 : index
    %c0_3 = arith.constant 0 : index
    %4 = vector.load %arg3[%c0_2, %c0_3] : memref<32x256xbf16, #tpu.memory_space<vmem>>, vector<32x256xbf16>
    %cst = arith.constant dense<0.000000e+00> : vector<2x256xf32>
    %5 = tpu.matmul %3, %4, %cst {dimension_numbers = #tpu.dot_dimension_numbers<[1], [0], [0], [1], [0, 0, 1, 1], [], []>} : vector<2x32xbf16>, vector<32x256xbf16>, vector<2x256xf32> -> vector<2x256xf32>
    %6 = arith.truncf %5 : vector<2x256xf32> to vector<2x256xbf16>
    %7 = arith.extf %6 : vector<2x256xbf16> to vector<2x256xf32>
    %c0_4 = arith.constant 0 : index
    %c0_5 = arith.constant 0 : index
    %c0_6 = arith.constant 0 : index
    %8 = vector.load %arg5[%c0_4, %c0_5, %c0_6] : memref<1x2x1xf32, #tpu.memory_space<vmem>>, vector<1x2x1xf32>
    %c0_7 = arith.constant 0 : index
    %c0_8 = arith.constant 0 : index
    %9 = vector.load %arg4[%c0_7, %c0_8] : memref<1x256xf32, #tpu.memory_space<vmem>>, vector<1x256xf32>
    %10 = vector.broadcast %9 : vector<1x256xf32> to vector<2x256xf32>
    %11 = arith.mulf %7, %10 : vector<2x256xf32>
    %cst_9 = arith.constant dense<0.000000e+00> : vector<2xf32>
    %12 = vector.multi_reduction <add>, %11, %cst_9 [1] : vector<2x256xf32> to vector<2xf32>
    %13 = vector.shape_cast %12 : vector<2xf32> to vector<2x1xf32>
    %14 = vector.shape_cast %13 : vector<2x1xf32> to vector<1x2x1xf32>
    %15 = arith.addf %8, %14 : vector<1x2x1xf32>
    %c0_10 = arith.constant 0 : index
    %c0_11 = arith.constant 0 : index
    %c0_12 = arith.constant 0 : index
    %16 = vector.load %arg5[%c0_10, %c0_11, %c0_12] : memref<1x2x1xf32, #tpu.memory_space<vmem>>, vector<1x2x1xf32>
    tpu.vector_store %arg5[%c0_10, %c0_11, %c0_12], %15 {strides = array<i32>} : memref<1x2x1xf32, #tpu.memory_space<vmem>>, vector<1x2x1xf32>,
    return
  }
  func.func @transform_0(%arg0: i32, %arg1: i32) -> (i32, i32) {
    %c0_i32 = arith.constant 0 : i32
    %c0_i32_0 = arith.constant 0 : i32
    %c0_i32_1 = arith.constant 0 : i32
    return %c0_i32, %c0_i32_0 : i32, i32
  }
  func.func @transform_1(%arg0: i32, %arg1: i32) -> (i32, i32) {
    %c1_i32 = arith.constant 1 : i32
    %0 = arith.muli %arg0, %c1_i32 : i32
    %1 = arith.addi %0, %arg1 : i32
    %c0_i32 = arith.constant 0 : i32
    %c0_i32_0 = arith.constant 0 : i32
    return %c0_i32, %1 : i32, i32
  }
  func.func @transform_2(%arg0: i32, %arg1: i32) -> (i32, i32) {
    %c1_i32 = arith.constant 1 : i32
    %0 = arith.muli %arg0, %c1_i32 : i32
    %1 = arith.addi %0, %arg1 : i32
    %c0_i32 = arith.constant 0 : i32
    %c0_i32_0 = arith.constant 0 : i32
    return %c0_i32, %1 : i32, i32
  }
  func.func @transform_3(%arg0: i32, %arg1: i32) -> (i32, i32, i32) {
    %c0_i32 = arith.constant 0 : i32
    %c0_i32_0 = arith.constant 0 : i32
    %c0_i32_1 = arith.constant 0 : i32
    return %arg0, %c0_i32, %c0_i32_0 : i32, i32, i32
  }
}

</mosaic_0001>

<bundles_post_ra>
// kernel: tpu_custom_call.1
= control target key start
LH: loop header
LB: loop body
LE: loop exit
PB: predicated region body
PF: predicated region fallthrough
CT: control target
= control target key end

     0   :  { %8 = vsyncpa [#allocation3], 0  ;;  %s307_s0 = inlined_call_operand.hbm [shape: bf16[2,32], index: 0, kind: input, shape index: {}]   ;;  %s308_s1 = inlined_call_operand.hbm [shape: bf16[32,256], index: 1, kind: input, shape index: {}]   ;;  %s309_s2 = inlined_call_operand.hbm [shape: f32[1,256], index: 2, kind: input, shape index: {}]   ;;  %s310_s3 = inlined_call_operand.vmem [shape: f32[1,2,1], index: 3, kind: output, shape index: {}]  }
   0x1   :  { %9 = vsyncpa [#allocation5], 0  ;;  %s29_s14 = sshll.u32 %s308_s1, 4  ;;  %s261_s15 = smov [#allocation4]   ;;  %s30_s14 = int_to_ptr.hbm [resolvable:$true] %s29_s14 }
   0x2   :  { %s31_s16 = sshll.u32 %s261_s15, 4  ;;  %s15_s19 = sshll.u32 %s307_s0, 4  ;;  %s32_s16 = int_to_ptr.vmem [resolvable:$true] %s31_s16  ;;  %s16_s19 = int_to_ptr.hbm [resolvable:$true] %s15_s19 }
   0x3   :  { %s262_s20 = smov 128   ;;  %s263_s21 = smov 8  }
   0x4   :  { %37 = dma.hbm_to_vmem [thread:$0]  %s30_s14, 512, %s32_s16, [#allocation5], %s262_s20, %s262_s20, %s263_s21  }
   0x5   :  { %s264_s22 = smov [#allocation2]   ;;  %s46_s26 = sshll.u32 %s309_s2, 4  ;;  %s47_s26 = int_to_ptr.hbm [resolvable:$true] %s46_s26 }
   0x6   :  { %s17_s23 = sshll.u32 %s264_s22, 4  ;;  %s265_s1 = smov [#allocation6]   ;;  %s18_s23 = int_to_ptr.vmem [resolvable:$true] %s17_s23 }
   0x7   :  { %20 = dma.hbm_to_vmem [thread:$0]  %s16_s19, 16, %s18_s23, [#allocation3]  }
   0x8   :  { %s48_s27 = sshll.u32 %s265_s1, 4  ;;  %s49_s27 = int_to_ptr.vmem [resolvable:$true] %s48_s27 }
   0x9   :  { %51 = dma.hbm_to_vmem [thread:$0]  %s47_s26, 32, %s49_s27, [#allocation5]  }
   0xa   :  { %257 = dma.done.wait [#allocation3], 16  }
   0xb   :  { %258 = vsyncadd [#allocation3], 4294967280 }
   0xc   :  { %259 = dma.done.wait [#allocation5], 544  }
   0xd   :  { %260 = vsyncadd [#allocation5], 4294966752  ;;  %v167_v0 = vld [vmem:[#allocation4 + $0x10] sm:$0xf]  ;;  %v178_v1 = vld [vmem:[#allocation4 + $0x14] sm:$0xf0] }
   0xe   :  { %v177_v2 = vld [vmem:[#allocation4 + $0x14] sm:$0xf]  ;;  %v168_v3 = vor.u32 %v178_v1, %v167_v0  ;;  %v169_v4 = vld [vmem:[#allocation4 + $0x18] sm:$0xf0]  ;;  %v159_v5 = vld [vmem:[#allocation4] sm:$0xf] }
   0xf   :  { %v176_v6 = vld [vmem:[#allocation4 + $0x4] sm:$0xf0]  ;;  %v172_v7 = vor.u32 %v177_v2, %v169_v4  ;;  %v175_v8 = vld [vmem:[#allocation4 + $0x4] sm:$0xf]  ;;  %v161_v9 = vld [vmem:[#allocation4 + $0x8] sm:$0xf0] }
  0x10   :  { %110 = vmatpush.bf16.msra.mxu0 %v168_v3  ;;  %v160_v10 = vor.u32 %v176_v6, %v159_v5  ;;  %v164_v11 = vor.u32 %v175_v8, %v161_v9  ;;  %v75_v12 = vld [vmem:[#allocation2] sm:$0x1]  ;;  %vm100_vm0 = vcmask 261120   ;;  %vm73_vm1 = vcmask 1024   ;;  %v134_v14 = vld [vmem:[#allocation6] sm:$0x3] }
  0x11   :  { %123 = vmatpush.bf16.msra.mxu1 %v172_v7  ;;  %v266_v13 = vmov 0.0   ;;  %v136_v18 = vperm.slane %v134_v14, 0  ;;  %v137_v19 = vperm.slane %v134_v14, 1  ;;  %vm142_vm2 = vcmask 1041408  }
  0x12   :  { %74 = vst.msk [vmem:[%s310_s3] sm:$0x3] %vm73_vm1, %v266_v13 }
  0x14   :  { %111 = vmatpush.bf16.msra.mxu0 %v160_v10 }
  0x15   :  { %124 = vmatpush.bf16.msra.mxu1 %v164_v11 }
  0x17   :  { %173 = vmatmul.msk.bf16.vlgmr.msra.gmra.mxu0 %vm100_vm0, %v75_v12 }
  0x18   :  { %174 = vmatmul.msk.bf16.vlgmr.msra.gmra.mxu1 %vm100_vm0, %v75_v12 }
  0x19   :  { %v133_v29 = vld [vmem:[%s310_s3] sm:$0x3] }
  0x94   :  { %v113_v15 = vpop.f32.mrf.mxu0 }
  0x95   :  { %v126_v16 = vpop.f32.mrf.mxu1 }
  0x96   :  { %v130_v17 = vpack.c.bf16 %v126_v16, %v113_v15 }
  0x98   :  { %v131_v20 = vunpack.c.l.bf16 %v130_v17  ;;  %v132_v21 = vunpack.c.h.bf16 %v130_v17 }
  0x9a   :  { %v140_v22 = vmul.f32 %v136_v18, %v131_v20  ;;  %v141_v23 = vmul.f32 %v137_v19, %v132_v21 }
  0x9c   :  { %v115_v24 = vpop.f32.mrf.mxu0  ;;  %v143_v25 = vsel %vm142_vm2, %v140_v22, 0.0  ;;  %v144_v26 = vsel %vm142_vm2, %v141_v23, 0.0 }
  0x9d   :  { %v128_v27 = vpop.f32.mrf.mxu1  ;;  %v145_v28 = vadd.f32 %v144_v26, %v143_v25 }
  0x9f   :  { %146 = vadd.xlane.f32.xlu0 %v145_v28 }
 0x112   :  { %v147_v30 = vpop.xlane.xlu0 %146 }
 0x113   :  { %v148_v31 = vadd.f32 %v147_v30, %v133_v29 }
 0x115   :  { %150 = vst.msk [vmem:[%s310_s3] sm:$0x3] %vm73_vm1, %v148_v31 }
 0x116   :  { %155 = vsyncpa [#allocation3], 1 }
 0x117   :  { %156 = vsyncpa [#allocation5], 1 }

</bundles_post_ra>
